<compile_context>
chip_gen: v7x
topology: tpu7x:2x2x1
jax: 0.10.0
libtpu: 0.0.40
codegen_flags: <defaults>
</compile_context>

<pallas_src>
import functools

import jax
import jax.numpy as jnp
from jax.experimental import pallas as pl
from jax.experimental.pallas import tpu as pltpu


# Conservative working-set budget / scoped-VMEM limit that is safe on every
# generation (v5e/v6e: 128 MiB physical, v7x: 64 MiB physical, 32 MiB scoped default).
_VMEM_WORKSET_BUDGET = 20 * 1024 * 1024
_VMEM_LIMIT_BYTES = 32 * 1024 * 1024


def _attention_kernel(x_ref, hb_ref, w1x_ref, w2_ref, z_ref, attn_ref, *, seq_len):
    # x_ref:    (TB, SP, H)  input vectors (SP = S padded to the sublane packing)
    # hb_ref:   (TB, H)      precomputed h @ W1_h + b1 (hoisted, dense 2-D, f32)
    # w1x_ref:  (H, H)       fc_1 weight (input-vector half), transposed to (in, out)
    # w2_ref:   (1, H)       fc_2 weight row (b2 dropped: cancels in the softmax)
    # z_ref:    (TB, H)      context vectors, lane-dense (reshaped to (B,1,H) outside)
    # attn_ref: (TB, SP)     attention weights, lane-dense (reshaped to (B,S,1) outside)
    TB, SP, H = x_ref.shape
    x = x_ref[...]                                                   # (TB, SP, H)

    # fc_1, x-half: one (TB*SP, H) @ (H, H) MXU matmul with f32 accumulation.
    # SP is padded in the wrapper so this reshape is a free view (no VMEM repack).
    hid = jnp.dot(x.reshape(TB * SP, H), w1x_ref[...],
                  preferred_element_type=jnp.float32).reshape(TB, SP, H)
    hid = jnp.tanh(hid + hb_ref[...][:, None, :])                    # + (h@W1_h + b1), EUP tanh

    # fc_2 as VPU multiply + lane (XLU) reduce — avoids a 1-column MXU matmul.
    scores = jnp.sum(hid * w2_ref[...].astype(jnp.float32), axis=-1)  # (TB, SP), f32

    if seq_len != SP:   # mask padded sequence positions out of the softmax
        pos = jax.lax.broadcasted_iota(jnp.int32, (TB, SP), 1)
        scores = jnp.where(pos < seq_len, scores, -jnp.inf)

    # softmax over the sequence axis (PyTorch dim=1 of (B, S, 1))
    m = jnp.max(scores, axis=-1, keepdims=True)
    e = jnp.exp(scores - m)
    denom = jnp.sum(e, axis=-1, keepdims=True)
    attn = e * pl.reciprocal(denom, approx=False)                    # EUP reciprocal
    attn_ref[...] = attn.astype(attn_ref.dtype)

    # z = attn^T x : batched (1, SP) @ (SP, H) contraction on the MXU; avoids
    # materializing a (TB, SP, H) f32 temp of x*attn.  Padded positions have attn==0.
    z = jnp.einsum('bqs,bsh->bqh', attn[:, None, :].astype(x.dtype), x,
                   preferred_element_type=jnp.float32)               # (TB, 1, H)
    z_ref[...] = z[:, 0, :].astype(z_ref.dtype)


def _choose_batch_tile(B, S_pad, H, x_itemsize, budget_bytes):
    """Pick (TB, B_pad): batch tile and padded batch size.

    TB must be a multiple of 8 (sublane alignment of the dense 2-D hb/z/attn blocks)
    or equal to the full (padded) batch.  We take the LARGEST TB whose working set
    fits `budget_bytes`, then cap it at half the padded batch when the batch is big
    enough, so the grid has >= 2 steps (lets v7x shard across its 2 TensorCores).
    """

    def ws(tb):
        x_blk = 2 * tb * S_pad * H * x_itemsize          # double-buffered x block
        temps = 3 * tb * S_pad * H * 4                   # hid / exp / product f32 temps
        small = 2 * (2 * tb * H * 4 + tb * S_pad * 4)    # hb + z + attn blocks (2-buf)
        wts = 2 * (H * H * x_itemsize + H * 4)           # weights (2-buf)
        return x_blk + temps + small + wts

    # Tiny batch that fits: one full-extent block, no padding, no alignment issue.
    if B < 16 and ws(B) <= budget_bytes:
        return B, B

    b_pad8 = -(-B // 8) * 8
    tb = 8
    while tb + 8 <= b_pad8 and ws(tb + 8) <= budget_bytes:
        tb += 8
    # Keep >= 2 grid steps when the batch allows it (v7x: 2 TensorCores).
    if b_pad8 >= 16 and tb > b_pad8 // 2:
        tb = max(8, ((b_pad8 // 2) // 8) * 8)
    b_pad = -(-B // tb) * tb
    return tb, b_pad


def attention_concat(input_vectors, last_hidden_state, params, *,
                     block_batch=None, compute_dtype=None):
    """input_vectors: (B, S, H), last_hidden_state: (B, H) -> (z (B,1,H), attn (B,S,1)).

    compute_dtype=jnp.bfloat16 ships x / W1_x in bf16 (recommended on v6e/v7x:
    halves the dominant HBM read; f32 accumulation, f32 softmax).  Expect ~1e-2
    absolute error vs. the f32 reference in that mode.
    """
    B, S, H = input_vectors.shape
    out_dtype = input_vectors.dtype
    w1, b1, w2 = params["w1"], params["b1"], params["w2"]

    # PyTorch Linear stores weight as (out_features, in_features); y = x @ W.T + b.
    # fc_1: in = 2H (first H cols act on x, last H cols act on h), out = H.
    w1_t = w1.T.astype(jnp.float32)   # (2H, H)
    w1x = w1_t[:H, :]                 # (H, H)
    w1h = w1_t[H:, :]                 # (H, H)

    # Hoisted hidden-state projection: one MXU-efficient (B,H)@(H,H) matmul outside
    # the kernel, passed in as a dense (B, H) f32 bias.  fc_2 bias b2 is dropped:
    # constant shift, cancels in the softmax over the sequence axis.
    hb = last_hidden_state.astype(jnp.float32) @ w1h + b1.astype(jnp.float32)   # (B, H)
    w2_row = w2.reshape(1, H).astype(jnp.float32)

    x = input_vectors
    if compute_dtype is not None:
        x = x.astype(compute_dtype)
        w1x = w1x.astype(compute_dtype)

    x_itemsize = jnp.dtype(x.dtype).itemsize
    # Pad S to the sublane packing (8 rows for 4-byte, 16 for 2-byte dtypes) so the
    # in-kernel (TB*S, H) collapse is a free view; padded rows are masked in-kernel.
    s_align = 8 * max(1, 4 // x_itemsize)
    S_pad = -(-S // s_align) * s_align

    if block_batch is not None:
        TB = block_batch
        B_pad = -(-B // TB) * TB
    else:
        TB, B_pad = _choose_batch_tile(B, S_pad, H, x_itemsize, _VMEM_WORKSET_BUDGET)

    if (B_pad, S_pad) != (B, S):
        x = jnp.pad(x, ((0, B_pad - B), (0, S_pad - S), (0, 0)))
    if B_pad != B:
        hb = jnp.pad(hb, ((0, B_pad - B), (0, 0)))

    grid = (B_pad // TB,)
    kernel = functools.partial(_attention_kernel, seq_len=S)

    z, attn = pl.pallas_call(
        kernel,
        out_shape=(
            jax.ShapeDtypeStruct((B_pad, H), out_dtype),        # z, lane-dense
            jax.ShapeDtypeStruct((B_pad, S_pad), out_dtype),    # attn, lane-dense
        ),
        grid_spec=pltpu.PrefetchScalarGridSpec(
            num_scalar_prefetch=0,
            grid=grid,
            in_specs=[
                pl.BlockSpec((TB, S_pad, H), lambda b: (b, 0, 0)),   # input vectors
                pl.BlockSpec((TB, H), lambda b: (b, 0)),             # h@W1_h + b1 (dense 2-D)
                pl.BlockSpec((H, H), lambda b: (0, 0)),              # W1_x (grid-invariant)
                pl.BlockSpec((1, H), lambda b: (0, 0)),              # w2 row (grid-invariant)
            ],
            out_specs=[
                pl.BlockSpec((TB, H), lambda b: (b, 0)),             # z (dense 2-D)
                pl.BlockSpec((TB, S_pad), lambda b: (b, 0)),         # attn (S on lane axis)
            ],
        ),
        compiler_params=pltpu.CompilerParams(
            dimension_semantics=("parallel",),
            vmem_limit_bytes=_VMEM_LIMIT_BYTES,
        ),
    )(x, hb, w1x, w2_row)

    # Back to the PyTorch output layout: (B, 1, H) and (B, S, 1); drop padding.
    z = z[:B].reshape(B, 1, H).astype(out_dtype)
    attn = attn[:B, :S].reshape(B, S, 1).astype(out_dtype)
    return z, attn


def attention_concat_ref(input_vectors, last_hidden_state, params):
    """Plain-JAX reference mirroring the PyTorch forward (alignment='concat')."""
    B, S, H = input_vectors.shape
    w1, b1, w2, b2 = params["w1"], params["b1"], params["w2"], params["b2"]
    h_exp = jnp.broadcast_to(last_hidden_state[:, None, :], (B, S, H))
    cat = jnp.concatenate([input_vectors, h_exp], axis=-1)        # (B, S, 2H)
    hid = jnp.tanh(cat @ w1.T + b1)                               # (B, S, H)
    scores = hid @ w2.T + b2                                      # (B, S, 1)
    attn = jax.nn.softmax(scores, axis=1)                         # softmax over seq
    z = jnp.sum(input_vectors * attn, axis=1, keepdims=True)      # (B, 1, H)
    return z, attn


if __name__ == "__main__":
    B, S, H = 2, 8, 32   # batch=2, seq=8, hidden=32

    key = jax.random.PRNGKey(0)
    k_x, k_h, k_w1, k_b1, k_w2, k_b2, k_x2, k_h2 = jax.random.split(key, 8)

    input_vectors = jax.random.normal(k_x, (B, S, H), dtype=jnp.float32)
    last_hidden_state = jax.random.normal(k_h, (B, H), dtype=jnp.float32)

    # Deterministic parameter init matching nn.Linear shapes:
    #   fc_1: weight (H, 2H), bias (H,)   [alignment='concat']
    #   fc_2: weight (1, H),  bias (1,)
    params = {
        "w1": jax.random.normal(k_w1, (H, 2 * H), dtype=jnp.float32) * 0.1,
        "b1": jax.random.normal(k_b1, (H,), dtype=jnp.float32) * 0.1,
        "w2": jax.random.normal(k_w2, (1, H), dtype=jnp.float32) * 0.1,
        "b2": jax.random.normal(k_b2, (1,), dtype=jnp.float32) * 0.1,
    }

    # --- f32 path (tight tolerance) ---
    z, attn = attention_concat(input_vectors, last_hidden_state, params)
    jax.block_until_ready((z, attn))
    z_ref, attn_ref = attention_concat_ref(input_vectors, last_hidden_state, params)
    assert z.shape == (B, 1, H) and attn.shape == (B, S, 1)
    assert jnp.allclose(z, z_ref, atol=1e-5, rtol=1e-5)
    assert jnp.allclose(attn, attn_ref, atol=1e-5, rtol=1e-5)

    # --- bf16-x path (v6e/v7x bandwidth mode; f32 accumulation, relaxed tolerance) ---
    z16, attn16 = attention_concat(input_vectors, last_hidden_state, params,
                                   compute_dtype=jnp.bfloat16)
    jax.block_until_ready((z16, attn16))
    assert jnp.allclose(z16, z_ref, atol=5e-2, rtol=5e-2)
    assert jnp.allclose(attn16, attn_ref, atol=5e-2, rtol=5e-2)

    # --- padded / masked path (uneven S, forced batch padding) ---
    B2, S2 = 3, 7
    x2 = jax.random.normal(k_x2, (B2, S2, H), dtype=jnp.float32)
    h2 = jax.random.normal(k_h2, (B2, H), dtype=jnp.float32)
    z2, attn2 = attention_concat(x2, h2, params, block_batch=8)
    jax.block_until_ready((z2, attn2))
    z2_ref, attn2_ref = attention_concat_ref(x2, h2, params)
    assert z2.shape == (B2, 1, H) and attn2.shape == (B2, S2, 1)
    assert jnp.allclose(z2, z2_ref, atol=1e-5, rtol=1e-5)
    assert jnp.allclose(attn2, attn2_ref, atol=1e-5, rtol=1e-5)

    print("KERNEL_OK")
</pallas_src>

<mosaic_0001>
module attributes {stable_mosaic.version = 11 : i64} {
  func.func @_attention_kernel(%arg0: i32, %arg1: memref<2x8x32xf32, #tpu.memory_space<vmem>>, %arg2: memref<2x32xf32, #tpu.memory_space<vmem>>, %arg3: memref<32x32xf32, #tpu.memory_space<vmem>>, %arg4: memref<1x32xf32, #tpu.memory_space<vmem>>, %arg5: memref<2x32xf32, #tpu.memory_space<vmem>>, %arg6: memref<2x8xf32, #tpu.memory_space<vmem>>) attributes {dimension_semantics = [#tpu.dimension_semantics<parallel>], iteration_bounds = array<i64: 1>, scalar_prefetch = 0 : i64, scratch_operands = 0 : i64, tpu.core_type = #tpu.core_type<tc>, window_params = [{transform_indices = @transform_0, window_bounds = array<i64: 2, 8, 32>}, {transform_indices = @transform_1, window_bounds = array<i64: 2, 32>}, {pipeline_mode = #tpu.pipeline_mode<synchronous>, transform_indices = @transform_2, window_bounds = array<i64: 32, 32>}, {pipeline_mode = #tpu.pipeline_mode<synchronous>, transform_indices = @transform_3, window_bounds = array<i64: 1, 32>}, {transform_indices = @transform_4, window_bounds = array<i64: 2, 32>}, {transform_indices = @transform_5, window_bounds = array<i64: 2, 8>}]} {
    %c0 = arith.constant 0 : index
    %c0_0 = arith.constant 0 : index
    %c0_1 = arith.constant 0 : index
    %0 = vector.load %arg1[%c0, %c0_0, %c0_1] : memref<2x8x32xf32, #tpu.memory_space<vmem>>, vector<2x8x32xf32>
    %1 = vector.shape_cast %0 : vector<2x8x32xf32> to vector<16x32xf32>
    %c0_2 = arith.constant 0 : index
    %c0_3 = arith.constant 0 : index
    %2 = vector.load %arg3[%c0_2, %c0_3] : memref<32x32xf32, #tpu.memory_space<vmem>>, vector<32x32xf32>
    %cst = arith.constant dense<0.000000e+00> : vector<16x32xf32>
    %3 = tpu.matmul %1, %2, %cst {dimension_numbers = #tpu.dot_dimension_numbers<[1], [0], [0], [1], [0, 0, 1, 1], [], []>} : vector<16x32xf32>, vector<32x32xf32>, vector<16x32xf32> -> vector<16x32xf32>
    %4 = vector.shape_cast %3 : vector<16x32xf32> to vector<2x8x32xf32>
    %c0_4 = arith.constant 0 : index
    %c0_5 = arith.constant 0 : index
    %5 = vector.load %arg2[%c0_4, %c0_5] : memref<2x32xf32, #tpu.memory_space<vmem>>, vector<2x32xf32>
    %6 = vector.shape_cast %5 : vector<2x32xf32> to vector<2x1x32xf32>
    %7 = vector.broadcast %6 : vector<2x1x32xf32> to vector<2x8x32xf32>
    %8 = arith.addf %4, %7 : vector<2x8x32xf32>
    %9 = math.tanh %8 : vector<2x8x32xf32>
    %c0_6 = arith.constant 0 : index
    %c0_7 = arith.constant 0 : index
    %10 = vector.load %arg4[%c0_6, %c0_7] : memref<1x32xf32, #tpu.memory_space<vmem>>, vector<1x32xf32>
    %11 = vector.shape_cast %10 : vector<1x32xf32> to vector<1x1x32xf32>
    %12 = vector.broadcast %11 : vector<1x1x32xf32> to vector<2x8x32xf32>
    %13 = arith.mulf %9, %12 : vector<2x8x32xf32>
    %cst_8 = arith.constant dense<0.000000e+00> : vector<2x8xf32>
    %14 = vector.multi_reduction <add>, %13, %cst_8 [2] : vector<2x8x32xf32> to vector<2x8xf32>
    %cst_9 = arith.constant dense<0xFF800000> : vector<2xf32>
    %15 = vector.multi_reduction <maximumf>, %14, %cst_9 [1] : vector<2x8xf32> to vector<2xf32>
    %16 = vector.shape_cast %15 : vector<2xf32> to vector<2x1xf32>
    %17 = vector.broadcast %16 : vector<2x1xf32> to vector<2x8xf32>
    %18 = arith.subf %14, %17 : vector<2x8xf32>
    %19 = math.exp %18 : vector<2x8xf32>
    %cst_10 = arith.constant dense<0.000000e+00> : vector<2xf32>
    %20 = vector.multi_reduction <add>, %19, %cst_10 [1] : vector<2x8xf32> to vector<2xf32>
    %21 = vector.shape_cast %20 : vector<2xf32> to vector<2x1xf32>
    %22 = tpu.reciprocal %21 : vector<2x1xf32> -> vector<2x1xf32>
    %23 = vector.broadcast %22 : vector<2x1xf32> to vector<2x8xf32>
    %24 = arith.mulf %19, %23 : vector<2x8xf32>
    %c0_11 = arith.constant 0 : index
    %c0_12 = arith.constant 0 : index
    %25 = vector.load %arg6[%c0_11, %c0_12] : memref<2x8xf32, #tpu.memory_space<vmem>>, vector<2x8xf32>
    tpu.vector_store %arg6[%c0_11, %c0_12], %24 {strides = array<i32>} : memref<2x8xf32, #tpu.memory_space<vmem>>, vector<2x8xf32>,
    %26 = vector.shape_cast %24 : vector<2x8xf32> to vector<2x1x8xf32>
    "tpu.trace_start"() <{level = 10 : i32, message = "bqs,bsh->bqh"}> : () -> ()
    %cst_13 = arith.constant dense<0.000000e+00> : vector<2x1x32xf32>
    %27 = tpu.matmul %26, %0, %cst_13 {dimension_numbers = #tpu.dot_dimension_numbers<[2], [1], [1], [2], [0, 0, 0, 1, 1, 2], [0], [0]>} : vector<2x1x8xf32>, vector<2x8x32xf32>, vector<2x1x32xf32> -> vector<2x1x32xf32>
    "tpu.trace_stop"() : () -> ()
    %28 = vector.shape_cast %27 : vector<2x1x32xf32> to vector<2x32xf32>
    %c0_14 = arith.constant 0 : index
    %c0_15 = arith.constant 0 : index
    %29 = vector.load %arg5[%c0_14, %c0_15] : memref<2x32xf32, #tpu.memory_space<vmem>>, vector<2x32xf32>
    tpu.vector_store %arg5[%c0_14, %c0_15], %28 {strides = array<i32>} : memref<2x32xf32, #tpu.memory_space<vmem>>, vector<2x32xf32>,
    return
  }
  func.func @transform_0(%arg0: i32) -> (i32, i32, i32) {
    %c0_i32 = arith.constant 0 : i32
    %c0_i32_0 = arith.constant 0 : i32
    %c0_i32_1 = arith.constant 0 : i32
    return %arg0, %c0_i32, %c0_i32_0 : i32, i32, i32
  }
  func.func @transform_1(%arg0: i32) -> (i32, i32) {
    %c0_i32 = arith.constant 0 : i32
    %c0_i32_0 = arith.constant 0 : i32
    return %arg0, %c0_i32 : i32, i32
  }
  func.func @transform_2(%arg0: i32) -> (i32, i32) {
    %c0_i32 = arith.constant 0 : i32
    %c0_i32_0 = arith.constant 0 : i32
    %c0_i32_1 = arith.constant 0 : i32
    return %c0_i32, %c0_i32_0 : i32, i32
  }
  func.func @transform_3(%arg0: i32) -> (i32, i32) {
    %c0_i32 = arith.constant 0 : i32
    %c0_i32_0 = arith.constant 0 : i32
    %c0_i32_1 = arith.constant 0 : i32
    return %c0_i32, %c0_i32_0 : i32, i32
  }
  func.func @transform_4(%arg0: i32) -> (i32, i32) {
    %c0_i32 = arith.constant 0 : i32
    %c0_i32_0 = arith.constant 0 : i32
    return %arg0, %c0_i32 : i32, i32
  }
  func.func @transform_5(%arg0: i32) -> (i32, i32) {
    %c0_i32 = arith.constant 0 : i32
    %c0_i32_0 = arith.constant 0 : i32
    return %arg0, %c0_i32 : i32, i32
  }
}

</mosaic_0001>

<bundles_post_ra>
// kernel: tpu_custom_call.1
= control target key start
LH: loop header
LB: loop body
LE: loop exit
PB: predicated region body
PF: predicated region fallthrough
CT: control target
= control target key end

     0   :  { %11 = vsyncpa [#allocation3], 0  ;;  %s750_s0 = inlined_call_operand.hbm [shape: f32[2,8,32], index: 0, kind: input, shape index: {}]   ;;  %s751_s1 = inlined_call_operand.vmem [shape: f32[2,32], index: 1, kind: input, shape index: {}]   ;;  %s752_s2 = inlined_call_operand.hbm [shape: f32[32,32], index: 2, kind: input, shape index: {}]   ;;  %s753_s3 = inlined_call_operand.vmem [shape: f32[1,32], index: 3, kind: input, shape index: {}]   ;;  %s754_s4 = inlined_call_operand.hbm [shape: f32[2,32], index: 4, kind: output, shape index: {0}]   ;;  %s755_s5 = inlined_call_operand.hbm [shape: f32[2,8], index: 5, kind: output, shape index: {1}]  }
   0x1   :  { %12 = vsyncpa [#allocation6], 0 }
   0x2   :  { %13 = vsyncpa [#allocation4], 0 }
   0x3   :  { %14 = vsyncpa [#allocation9], 0  ;;  %s625_s18 = smov [#allocation2]   ;;  %s529_s22 = scalar_lea.hbm %s750_s0, 256 }
   0x4   :  { %s20_s19 = sshll.u32 %s625_s18, 4  ;;  %p530_p0 = scmp.ne.s32.totalorder %s750_s0, %s529_s22  ;;  %s21_s19 = int_to_ptr.vmem [resolvable:$true] %s20_s19 }
   0x5   :  { %p533_p1 = scmp.lt.u32.totalorder %s529_s22, %s750_s0 }
   0x7   :  { %p535_p2 = pnand %p533_p1, %p530_p0 }
   0x9   :  { %538 = shalt.err (!%p535_p2)
}
   0xa   :  { %s539_s27 = scalar_lea.vmem %s21_s19, 256  ;;  %p544_p4 = scmp.lt.s32.totalorder %s21_s19, %s21_s19 }
   0xb   :  { %p540_p3 = scmp.ne.s32.totalorder %s21_s19, %s539_s27  ;;  %p545_p5 = scmp.lt.s32.totalorder %s539_s27, %s539_s27 }
   0xd   :  { %p546_p6 = por %p545_p5, %p544_p4 }
   0xf   :  { %p547_p7 = pnand %p546_p6, %p540_p3 }
  0x11   :  { %550 = shalt.err (!%p547_p7)
}
  0x12   :  { %s626_s28 = smov 128   ;;  %s627_s29 = smov 8  }
  0x13   :  { %26 = dma.hbm_to_vmem [thread:$0]  %s750_s0, 256, %s21_s19, [#allocation3], %s626_s28, %s626_s28, %s627_s29  }
  0x14   :  { %s628_s7 = smov [#allocation5]   ;;  %s551_s11 = scalar_lea.hbm %s752_s2, 512 }
  0x15   :  { %s34_s8 = sshll.u32 %s628_s7, 4  ;;  %p552_p8 = scmp.ne.s32.totalorder %s752_s2, %s551_s11  ;;  %s35_s8 = int_to_ptr.vmem [resolvable:$true] %s34_s8 }
  0x16   :  { %p555_p9 = scmp.lt.u32.totalorder %s551_s11, %s752_s2 }
  0x18   :  { %p557_p10 = pnand %p555_p9, %p552_p8 }
  0x1a   :  { %560 = shalt.err (!%p557_p10)
}
  0x1b   :  { %s561_s16 = scalar_lea.vmem %s35_s8, 512  ;;  %p566_p12 = scmp.lt.s32.totalorder %s35_s8, %s35_s8 }
  0x1c   :  { %p562_p11 = scmp.ne.s32.totalorder %s35_s8, %s561_s16  ;;  %p567_p13 = scmp.lt.s32.totalorder %s561_s16, %s561_s16 }
  0x1e   :  { %p568_p0 = por %p567_p13, %p566_p12 }
  0x20   :  { %p569_p1 = pnand %p568_p0, %p562_p11 }
  0x22   :  { %572 = shalt.err (!%p569_p1)
}
  0x23   :  { %40 = dma.hbm_to_vmem [thread:$0]  %s752_s2, 512, %s35_s8, [#allocation6], %s626_s28, %s626_s28, %s627_s29  }
  0x24   :  { %617 = dma.done.wait [#allocation3], 256  }
  0x25   :  { %618 = vsyncadd [#allocation3], 4294967040 }
  0x26   :  { %619 = dma.done.wait [#allocation6], 512  }
  0x27   :  { %620 = vsyncadd [#allocation6], 4294966784  ;;  %vm55_vm0 = vcmask 261120   ;;  %v51_v0 = vld [vmem:[#allocation5] sm:$0xff]  ;;  %v52_v1 = vld [vmem:[#allocation5 + $0x8] sm:$0xff]  ;;  %v150_v10 = vlaneseq  ;;  %vm202_vm1 = vcmask 1041409  }
  0x28   :  { %v53_v2 = vld [vmem:[#allocation5 + $0x10] sm:$0xff]  ;;  %v499_v3 = vpack.c.bf16 %v52_v1, %v51_v0  ;;  %v54_v4 = vld [vmem:[#allocation5 + $0x18] sm:$0xff]  ;;  %v629_v8 = vmov 1966171168   ;;  %vm205_vm2 = vcmask 58368   ;;  %v630_v40 = vmov 0  }
  0x29   :  { %v689_v5 = vld [vmem:[#allocation2] sm:$0xff]  ;;  %v503_v6 = vpack.c.bf16 %v54_v4, %v53_v2  ;;  %v693_v7 = vld [vmem:[#allocation2 + $0x8] sm:$0xff]  ;;  %v148_v9 = vunpack.c.l.s4 %v629_v8  ;;  %v697_v12 = vshrl.u32 %v150_v10, 7  ;;  %v193_v32 = vand.u32 127, %v150_v10  ;;  %518 = vset.pattern.permute.xlu0 %v630_v40  ;;  %517 = vset.pattern.permute.xlu1 %v630_v40 }
  0x2a   :  { %486 = vmatprep.mubr.msk.f32.mxu0 %vm55_vm0, %v689_v5  ;;  %500 = vmatprep.subr.bf16.mxu0 %v499_v3  ;;  %v464_v13 = vld.sshfl [vmem:[%s751_s1] sm:$0x11 pattern:$0x75316420]  ;;  %v631_v57 = vmov 0.0   ;;  %vm632_vm3 = vmmov 0  }
  0x2b   :  { %502 = vmatpush3.bf16.msra.mxu0 %v499_v3  ;;  %v149_v11 = vunpack.c.0.s8 %v148_v9  ;;  %v146_v14 = vcombine.high %v464_v13, %v464_v13  ;;  %v704_v17 = vsub.s32 0, %v697_v12  ;;  %v465_v25 = vld [vmem:[%s753_s3] ss:$0 sm:$0xff]  ;;  %v196_v34 = vsub.s32 %v193_v32, %v697_v12  ;;  %489 = vmatprep.subr.mxu1 %v631_v57  ;;  %s633_s3 = smov [#allocation8]  }
  0x2c   :  { %504 = vmatprep.subr.bf16.mxu0 %v503_v6  ;;  %v216_v41 = vsub.s32 1, %v697_v12  ;;  %490 = vmatpush3.msra.mxu1 %v689_v5  ;;  %vm280_vm4 = vcmask 64512   ;;  %s448_s20 = sshll.u32 %s633_s3, 4  ;;  %s449_s20 = int_to_ptr.vmem [resolvable:$true] %s448_s20 }
  0x2d   :  { %v152_v15 = vsub.s32 %v149_v11, %v697_v12  ;;  %494 = vmatprep.subr.mxu1 %v631_v57  ;;  %491 = vmatprep.mubr.msk.f32.mxu1 %vm632_vm3, %v631_v57  ;;  %s573_s21 = scalar_lea.vmem %s449_s20, 32  ;;  %p578_p3 = scmp.lt.s32.totalorder %s449_s20, %s449_s20 }
  0x2e   :  { %p574_p2 = scmp.ne.s32.totalorder %s449_s20, %s573_s21  ;;  %p579_p4 = scmp.lt.s32.totalorder %s573_s21, %s573_s21 }
  0x2f   :  { %506 = vmatpush3.bf16.msra.mxu0 %v503_v6  ;;  %v160_v16 = vrot.slane %v146_v14, %v152_v15  ;;  %v153_v18 = vrot.slane %v464_v13, %v152_v15 }
  0x30   :  { %p580_p5 = por %p579_p4, %p578_p3 }
  0x31   :  { %v168_v19 = vrot.slane %v160_v16, %v704_v17  ;;  %v164_v20 = vrot.slane %v153_v18, %v704_v17 }
  0x32   :  { %487 = vmatmul.mubr.msk.f32.vlgmr.msra.gmra.mrb[0].mxu0 %vm55_vm0, %v693_v7  ;;  %p581_p6 = pnand %p580_p5, %p574_p2 }
 0x105   :  { %v488_v21 = vpop.f32.mrb[0].mxu0 }
 0x106   :  { %v172_v22 = vadd.f32 %v488_v21, %v168_v19  ;;  %v128_v23 = vpop.f32.mrb[1].mxu0 }
 0x107   :  { %v171_v24 = vadd.f32 %v164_v20, %v128_v23 }
 0x108   :  { %519 = vtanh.f32 %v172_v22 }
 0x109   :  { %521 = vtanh.f32 %v171_v24 }
 0x112   :  { %v520_v26 = vpop.eup %519 }
 0x113   :  { %v522_v27 = vpop.eup %521  ;;  %v183_v30 = vmul.f32 %v520_v26, %v465_v25 }
 0x114   :  { %v182_v28 = vmul.f32 %v522_v27, %v465_v25 }
 0x115   :  { %v187_v31 = vsel %vm55_vm0, %v183_v30, 0.0 }
 0x116   :  { %v184_v29 = vsel %vm55_vm0, %v182_v28, 0.0 }
 0x117   :  { %185 = vadd.xlane.f32.xlu0 %v184_v29 }
 0x11b   :  { %188 = vadd.xlane.f32.xlu0 %v187_v31 }
 0x1a4   :  { %v186_v33 = vpop.xlane.xlu0 %185 }
 0x1a5   :  { %v197_v36 = vrot.slane %v186_v33, %v196_v34 }
 0x1a8   :  { %v189_v35 = vpop.xlane.xlu0 %188 }
 0x1a9   :  { %v201_v37 = vrot.slane %v189_v35, %v196_v34 }
 0x1ab   :  { %v203_v38 = vsel %vm202_vm1, %v201_v37, %v197_v36 }
 0x1ac   :  { %v206_v39 = vsel %vm205_vm2, %v203_v38, -inf }
 0x1ad   :  { %207 = vmax.xlane.f32.xlu1 %v206_v39 }
 0x23a   :  { %v208_v42 = vpop.xlane.xlu1 %207 }
 0x23b   :  { %v213_v43 = vrot.slane %v208_v42, %v704_v17  ;;  %v217_v44 = vrot.slane %v208_v42, %v216_v41 }
 0x23d   :  { %v220_v45 = vsub.f32 %v186_v33, %v213_v43  ;;  %v221_v46 = vsub.f32 %v189_v35, %v217_v44 }
 0x23f   :  { %v222_v47 = vmul.f32 1.442695, %v220_v45  ;;  %v224_v48 = vmul.f32 1.442695, %v221_v46 }
 0x241   :  { %523 = vpow2.f32 %v222_v47 }
 0x242   :  { %525 = vpow2.f32 %v224_v48 }
 0x24b   :  { %v524_v49 = vpop.eup %523 }
 0x24c   :  { %v526_v50 = vpop.eup %525  ;;  %229 = vperm.xlu1 %517, %v524_v49  }
 0x24d   :  { %232 = vperm.xlu0 %518, %v526_v50  }
 0x2cb   :  { %v230_v51 = vpop.permute.xlu1 %229 }
 0x2cc   :  { %v233_v52 = vpop.permute.xlu0 %232  ;;  %v237_v53 = vrot.slane %v230_v51, %v196_v34 }
 0x2cd   :  { %v241_v54 = vrot.slane %v233_v52, %v196_v34 }
 0x2cf   :  { %v242_v55 = vsel %vm202_vm1, %v241_v54, %v237_v53 }
 0x2d0   :  { %v244_v56 = vsel %vm205_vm2, %v242_v55, 0.0 }
 0x2d1   :  { %245 = vadd.xlane.f32.xlu1 %v244_v56 }
 0x35e   :  { %v246_v58 = vpop.xlane.xlu1 %245 }
 0x35f   :  { %527 = vrcp.f32 %v246_v58 }
 0x369   :  { %v528_v59 = vpop.eup %527 }
 0x36a   :  { %v252_v60 = vrot.slane %v528_v59, %v704_v17  ;;  %v256_v62 = vrot.slane %v528_v59, %v216_v41 }
 0x36c   :  { %v259_v61 = vmul.f32 %v524_v49, %v252_v60  ;;  %v260_v63 = vmul.f32 %v526_v50, %v256_v62 }
 0x36e   :  { %264 = vperm.xlu0 %518, %v259_v61  }
 0x372   :  { %267 = vperm.xlu0 %518, %v260_v63  }
 0x3ed   :  { %v265_v0 = vpop.permute.xlu0 %264 }
 0x3ee   :  { %v272_v1 = vrot.slane %v265_v0, %v196_v34 }
 0x3f0   :  { %492 = vmatmul.mubr.msk.f32.vlgmr.msra.gmra.mrb[0].mxu1 %vm280_vm4, %v272_v1 }
 0x3f1   :  { %495 = vmatpush3.msra.mxu1 %v693_v7  ;;  %v268_v2 = vpop.permute.xlu0 %267  ;;  %496 = vmatprep.mubr.msk.f32.mxu1 %vm632_vm3, %v631_v57 }
 0x3f2   :  { %v276_v3 = vrot.slane %v268_v2, %v196_v34 }
 0x3f4   :  { %497 = vmatmul.mubr.msk.f32.vlgmr.msra.gmra.mrb[2].mxu1 %vm280_vm4, %v276_v3  ;;  %v277_v4 = vsel %vm202_vm1, %v276_v3, %v272_v1 }
 0x3f5   :  { %279 = vst.msk [vmem:[#allocation8] sm:$0x3] %vm205_vm2, %v277_v4 }
 0x3f6   :  { %584 = shalt.err (!%p581_p6)
}
 0x3f7   :  { %s585_s24 = scalar_lea.hbm %s755_s5, 32 }
 0x3f8   :  { %p586_p7 = scmp.ne.s32.totalorder %s755_s5, %s585_s24  ;;  %p589_p8 = scmp.lt.u32.totalorder %s585_s24, %s755_s5 }
 0x3fa   :  { %p591_p9 = pnand %p589_p8, %p586_p7 }
 0x3fc   :  { %594 = shalt.err (!%p591_p9)
}
 0x3fd   :  { %451 = dma.vmem_to_hbm [thread:$0]  %s449_s20, 32, %s755_s5, [#allocation9]   ;;  %vm430_vm5 = vcmask 254976  }
 0x3fe   :  { %s634_s6 = smov [#allocation7]  }
 0x3ff   :  { %s438_s7 = sshll.u32 %s634_s6, 4  ;;  %s439_s7 = int_to_ptr.vmem [resolvable:$true] %s438_s7 }
 0x400   :  { %s595_s8 = scalar_lea.vmem %s439_s7, 32  ;;  %p600_p11 = scmp.lt.s32.totalorder %s439_s7, %s439_s7 }
 0x401   :  { %p596_p10 = scmp.ne.s32.totalorder %s439_s7, %s595_s8  ;;  %p601_p12 = scmp.lt.s32.totalorder %s595_s8, %s595_s8 }
 0x403   :  { %p602_p13 = por %p601_p12, %p600_p11 }
 0x405   :  { %p603_p0 = pnand %p602_p13, %p596_p10 }
 0x4c3   :  { %v349_v5 = vpop.f32.mrb[0].mxu1 }
 0x4c4   :  { %v493_v6 = vpop.f32.mrb[1].mxu1 }
 0x4c7   :  { %v421_v7 = vpop.f32.mrb[2].mxu1 }
 0x4c8   :  { %v427_v8 = vrot.slane %v421_v7, 7  ;;  %v498_v9 = vpop.f32.mrb[3].mxu1 }
 0x4ca   :  { %v428_v10 = vsel %vm202_vm1, %v427_v8, %v349_v5 }
 0x4cb   :  { %431 = vst.msk [vmem:[#allocation7] sm:$0x3] %vm430_vm5, %v428_v10 }
 0x4cc   :  { %606 = shalt.err (!%p603_p0)
}
 0x4cd   :  { %s607_s10 = scalar_lea.hbm %s754_s4, 32 }
 0x4ce   :  { %p608_p1 = scmp.ne.s32.totalorder %s754_s4, %s607_s10  ;;  %p611_p2 = scmp.lt.u32.totalorder %s607_s10, %s754_s4 }
 0x4d0   :  { %p613_p3 = pnand %p611_p2, %p608_p1 }
 0x4d2   :  { %616 = shalt.err (!%p613_p3)
}
 0x4d3   :  { %441 = dma.vmem_to_hbm [thread:$0]  %s439_s7, 32, %s754_s4, [#allocation4]  }
 0x4d4   :  { %621 = dma.done.wait [#allocation4], 32  }
 0x4d5   :  { %622 = vsyncadd [#allocation4], 4294967264 }
 0x4d6   :  { %623 = dma.done.wait [#allocation9], 32  }
 0x4d7   :  { %624 = vsyncadd [#allocation9], 4294967264 }
 0x4d8   :  { %458 = vsyncpa [#allocation3], 1 }
 0x4d9   :  { %459 = vsyncpa [#allocation6], 1 }
 0x4da   :  { %460 = vsyncpa [#allocation4], 1 }
 0x4db   :  { %461 = vsyncpa [#allocation9], 1 }

</bundles_post_ra>
